<compile_context>
chip_gen: v7x
topology: tpu7x:2x2x1
jax: 0.10.0
libtpu: 0.0.40
codegen_flags: <defaults>
</compile_context>

<pallas_src>
import jax
import jax.numpy as jnp
from jax.experimental import pallas as pl
from jax.experimental.pallas import tpu as pltpu


# ----------------------------------------------------------------------------
# Shared per-step body (traced inside both kernels).
# ----------------------------------------------------------------------------
def _cell_step(x, h, p):
    """x: (B, F), h: (B, F) f32, p: (F+1, F) = [W^T ; b] f32 -> new_h (B, F) f32."""
    F = p.shape[1]
    # Linear on the VPU: y = sum_k x[:, k] * W^T[k, :] + b
    # (static unroll, F == 4; keep MXU out of the picture for a 4-wide K).
    y = x[:, 0:1].astype(jnp.float32) * p[0:1, :]
    for k in range(1, F):
        y = y + x[:, k:k + 1].astype(jnp.float32) * p[k:k + 1, :]
    y = y + p[F:F + 1, :]                      # implicit (1,F)->(B,F) broadcast

    # Decision gate: y if y.sum() > 0 else -y  (global sum, one sign multiply).
    s = jnp.sum(y)
    sign = jnp.where(s > 0.0, jnp.float32(1.0), jnp.float32(-1.0))

    # Cell update (tanh on the EUP).
    return jnp.tanh(y * sign + h)


# ----------------------------------------------------------------------------
# Single-step kernel: exactly MyCell.forward(x, h).
# ----------------------------------------------------------------------------
def mycell_kernel(x_ref, h_ref, wtb_ref, out_ref):
    # x_ref, h_ref: (B, F); wtb_ref: (F+1, F) = [W^T ; b]; out_ref: (B, F)
    new_h = _cell_step(x_ref[...], h_ref[...].astype(jnp.float32), wtb_ref[...])
    out_ref[...] = new_h.astype(out_ref.dtype)


def pack_params(w, b):
    """Pack PyTorch-layout Linear params ONCE: (F,F) weight + (F,) bias -> (F+1,F)."""
    return jnp.concatenate([w.T, b[None, :]], axis=0).astype(jnp.float32)


@jax.jit
def mycell_forward(x, h, wtb):
    """Single MyCell step. x, h: (B, F); wtb: (F+1, F) pre-packed [W^T ; b]."""
    B, F = x.shape
    vmem = pl.BlockSpec(memory_space=pltpu.MemorySpace.VMEM)
    return pl.pallas_call(
        mycell_kernel,
        out_shape=jax.ShapeDtypeStruct((B, F), x.dtype),
        in_specs=[vmem, vmem, vmem],
        out_specs=vmem,
    )(x, h, wtb)


# ----------------------------------------------------------------------------
# Multi-step kernel: T applications of MyCell in ONE pallas_call.
# grid=(T,) "arbitrary"; weights + h0 resident; h carried in VMEM scratch.
# ----------------------------------------------------------------------------
def mycell_seq_kernel(x_ref, h0_ref, wtb_ref, out_ref, h_sc):
    # x_ref:   (1, B, F)  -- input for timestep t
    # h0_ref:  (B, F)     -- initial hidden (constant index_map, DMA'd once)
    # wtb_ref: (F+1, F)   -- packed params (constant index_map, DMA'd once)
    # out_ref: (1, B, F)  -- new_h at timestep t
    # h_sc:    VMEM (B, F) f32 scratch, persists across grid steps
    t = pl.program_id(0)

    @pl.when(t == 0)
    def _():
        h_sc[...] = h0_ref[...].astype(jnp.float32)

    new_h = _cell_step(x_ref[0], h_sc[...], wtb_ref[...])
    h_sc[...] = new_h
    out_ref[0] = new_h.astype(out_ref.dtype)


@jax.jit
def mycell_seq(xs, h0, wtb):
    """Run MyCell over T steps. xs: (T, B, F); h0: (B, F); wtb: (F+1, F).

    Returns all hidden states, shape (T, B, F) (last row == final hidden)."""
    T, B, F = xs.shape
    return pl.pallas_call(
        mycell_seq_kernel,
        out_shape=jax.ShapeDtypeStruct((T, B, F), xs.dtype),
        grid=(T,),
        in_specs=[
            pl.BlockSpec((1, B, F), lambda t: (t, 0, 0)),   # x_t
            pl.BlockSpec((B, F), lambda t: (0, 0)),         # h0 (resident)
            pl.BlockSpec((F + 1, F), lambda t: (0, 0)),     # wtb (resident)
        ],
        out_specs=pl.BlockSpec((1, B, F), lambda t: (t, 0, 0)),
        scratch_shapes=[pltpu.VMEM((B, F), jnp.float32)],
        compiler_params=pltpu.CompilerParams(
            dimension_semantics=("arbitrary",)),  # h carry -> sequential
    )(xs, h0, wtb)


if __name__ == "__main__":
    key = jax.random.PRNGKey(0)
    kx, kh, kw, kb, ks = jax.random.split(key, 5)

    B, F, T = 3, 4, 8  # tutorial uses x = torch.rand(3, 4), h = torch.rand(3, 4)

    x = jax.random.uniform(kx, (B, F), dtype=jnp.float32)
    h = jax.random.uniform(kh, (B, F), dtype=jnp.float32)
    xs = jax.random.uniform(ks, (T, B, F), dtype=jnp.float32)

    # Deterministic nn.Linear(4, 4)-style init: U(-1/sqrt(in), 1/sqrt(in))
    bound = 1.0 / (F ** 0.5)
    w = jax.random.uniform(kw, (F, F), minval=-bound, maxval=bound,
                           dtype=jnp.float32)
    b = jax.random.uniform(kb, (F,), minval=-bound, maxval=bound,
                           dtype=jnp.float32)

    # Pack params ONCE (init-time), reuse across every call.
    wtb = pack_params(w, b)

    # --- single step (== MyCell.forward) -------------------------------------
    new_h = mycell_forward(x, h, wtb)
    jax.block_until_ready(new_h)

    y_ref = x @ w.T + b
    gated_ref = jnp.where(jnp.sum(y_ref) > 0, y_ref, -y_ref)
    ref = jnp.tanh(gated_ref + h)
    assert jnp.allclose(new_h, ref, atol=1e-5, rtol=1e-5)

    # --- T steps in one launch (amortized) ------------------------------------
    hs = mycell_seq(xs, h, wtb)
    jax.block_until_ready(hs)

    def ref_step(h_c, x_t):
        y = x_t @ w.T + b
        y = jnp.where(jnp.sum(y) > 0, y, -y)
        nh = jnp.tanh(y + h_c)
        return nh, nh

    _, hs_ref = jax.lax.scan(ref_step, h, xs)
    assert jnp.allclose(hs, hs_ref, atol=1e-5, rtol=1e-5)

    print("KERNEL_OK")
</pallas_src>

<mosaic_0001>
module attributes {stable_mosaic.version = 11 : i64} {
  func.func @mycell_kernel(%arg0: memref<3x4xf32, #tpu.memory_space<vmem>>, %arg1: memref<3x4xf32, #tpu.memory_space<vmem>>, %arg2: memref<5x4xf32, #tpu.memory_space<vmem>>, %arg3: memref<3x4xf32, #tpu.memory_space<vmem>>) attributes {dimension_semantics = [], scalar_prefetch = 0 : i64, scratch_operands = 0 : i64, tpu.core_type = #tpu.core_type<tc>} {
    %c0 = arith.constant 0 : index
    %c0_0 = arith.constant 0 : index
    %0 = vector.load %arg0[%c0, %c0_0] : memref<3x4xf32, #tpu.memory_space<vmem>>, vector<3x4xf32>
    %c0_1 = arith.constant 0 : index
    %c0_2 = arith.constant 0 : index
    %1 = vector.load %arg1[%c0_1, %c0_2] : memref<3x4xf32, #tpu.memory_space<vmem>>, vector<3x4xf32>
    %c0_3 = arith.constant 0 : index
    %c0_4 = arith.constant 0 : index
    %2 = vector.load %arg2[%c0_3, %c0_4] : memref<5x4xf32, #tpu.memory_space<vmem>>, vector<5x4xf32>
    %3 = vector.extract_strided_slice %0 {offsets = [0, 0], sizes = [3, 1], strides = [1, 1]} : vector<3x4xf32> to vector<3x1xf32>
    %4 = vector.extract_strided_slice %2 {offsets = [0, 0], sizes = [1, 4], strides = [1, 1]} : vector<5x4xf32> to vector<1x4xf32>
    %5 = vector.broadcast %3 : vector<3x1xf32> to vector<3x4xf32>
    %6 = vector.broadcast %4 : vector<1x4xf32> to vector<3x4xf32>
    %7 = arith.mulf %5, %6 : vector<3x4xf32>
    %8 = vector.extract_strided_slice %0 {offsets = [0, 1], sizes = [3, 1], strides = [1, 1]} : vector<3x4xf32> to vector<3x1xf32>
    %9 = vector.extract_strided_slice %2 {offsets = [1, 0], sizes = [1, 4], strides = [1, 1]} : vector<5x4xf32> to vector<1x4xf32>
    %10 = vector.broadcast %8 : vector<3x1xf32> to vector<3x4xf32>
    %11 = vector.broadcast %9 : vector<1x4xf32> to vector<3x4xf32>
    %12 = arith.mulf %10, %11 : vector<3x4xf32>
    %13 = arith.addf %7, %12 : vector<3x4xf32>
    %14 = vector.extract_strided_slice %0 {offsets = [0, 2], sizes = [3, 1], strides = [1, 1]} : vector<3x4xf32> to vector<3x1xf32>
    %15 = vector.extract_strided_slice %2 {offsets = [2, 0], sizes = [1, 4], strides = [1, 1]} : vector<5x4xf32> to vector<1x4xf32>
    %16 = vector.broadcast %14 : vector<3x1xf32> to vector<3x4xf32>
    %17 = vector.broadcast %15 : vector<1x4xf32> to vector<3x4xf32>
    %18 = arith.mulf %16, %17 : vector<3x4xf32>
    %19 = arith.addf %13, %18 : vector<3x4xf32>
    %20 = vector.extract_strided_slice %0 {offsets = [0, 3], sizes = [3, 1], strides = [1, 1]} : vector<3x4xf32> to vector<3x1xf32>
    %21 = vector.extract_strided_slice %2 {offsets = [3, 0], sizes = [1, 4], strides = [1, 1]} : vector<5x4xf32> to vector<1x4xf32>
    %22 = vector.broadcast %20 : vector<3x1xf32> to vector<3x4xf32>
    %23 = vector.broadcast %21 : vector<1x4xf32> to vector<3x4xf32>
    %24 = arith.mulf %22, %23 : vector<3x4xf32>
    %25 = arith.addf %19, %24 : vector<3x4xf32>
    %26 = vector.extract_strided_slice %2 {offsets = [4, 0], sizes = [1, 4], strides = [1, 1]} : vector<5x4xf32> to vector<1x4xf32>
    %27 = vector.broadcast %26 : vector<1x4xf32> to vector<3x4xf32>
    %28 = arith.addf %25, %27 : vector<3x4xf32>
    %29 = vector.shape_cast %28 : vector<3x4xf32> to vector<1x3x4xf32>
    %cst = arith.constant dense<0.000000e+00> : vector<1xf32>
    %30 = vector.multi_reduction <add>, %29, %cst [1, 2] : vector<1x3x4xf32> to vector<1xf32>
    %31 = vector.shape_cast %30 : vector<1xf32> to vector<1x1x1xf32>
    %32 = vector.extract %31[0, 0, 0] : f32 from vector<1x1x1xf32>
    %cst_5 = arith.constant 0.000000e+00 : f32
    %33 = arith.cmpf ogt, %32, %cst_5 : f32
    %cst_6 = arith.constant 1.000000e+00 : f32
    %cst_7 = arith.constant -1.000000e+00 : f32
    %34 = arith.select %33, %cst_6, %cst_7 : f32
    %35 = vector.broadcast %34 : f32 to vector<3x4xf32>
    %36 = arith.mulf %28, %35 : vector<3x4xf32>
    %37 = arith.addf %36, %1 : vector<3x4xf32>
    %38 = math.tanh %37 : vector<3x4xf32>
    %c0_8 = arith.constant 0 : index
    %c0_9 = arith.constant 0 : index
    %39 = vector.load %arg3[%c0_8, %c0_9] : memref<3x4xf32, #tpu.memory_space<vmem>>, vector<3x4xf32>
    tpu.vector_store %arg3[%c0_8, %c0_9], %38 {strides = array<i32>} : memref<3x4xf32, #tpu.memory_space<vmem>>, vector<3x4xf32>,
    return
  }
}

</mosaic_0001>

<bundles_post_ra>
// kernel: mycell_forward.1
= control target key start
LH: loop header
LB: loop body
LE: loop exit
PB: predicated region body
PF: predicated region fallthrough
CT: control target
= control target key end

     0   :  { %v133_v1 = vmov 0   ;;  %v134_v2 = vmov 2   ;;  %s181_s0 = inlined_call_operand.vmem [shape: f32[3,4], index: 0, kind: input, shape index: {}]   ;;  %s182_s1 = inlined_call_operand.vmem [shape: f32[3,4], index: 1, kind: input, shape index: {}]   ;;  %s183_s2 = inlined_call_operand.vmem [shape: f32[5,4], index: 2, kind: input, shape index: {}]   ;;  %s184_s3 = inlined_call_operand.hbm [shape: f32[3,4], index: 3, kind: output, shape index: {}]  }
   0x1   :  { %v15_v0 = vld [vmem:[%s181_s0] sm:$0x7]  ;;  %102 = vset.pattern.permute.xlu0 %v133_v1  ;;  %104 = vset.pattern.permute.xlu1 %v134_v2 }
   0x2   :  { %8 = vsyncpa [#allocation3], 0  ;;  %20 = vperm.xlu0 %102, %v15_v0   ;;  %39 = vperm.xlu1 %104, %v15_v0   ;;  %v135_v3 = vmov 1   ;;  %v136_v4 = vmov 3   ;;  %v23_v5 = vlaneseq  ;;  %v17_v9 = vld [vmem:[%s183_s2] sm:$0x1f] }
   0x3   :  { %vm63_vm0 = vcmask 26624   ;;  %v16_v38 = vld [vmem:[%s182_s1] sm:$0x7]  ;;  %s137_s18 = smov [#allocation2]  }
   0x4   :  { %v24_v6 = vshrl.u32 %v23_v5, 7  ;;  %s87_s19 = sshll.u32 %s137_s18, 4  ;;  %s88_s19 = int_to_ptr.vmem [resolvable:$true] %s87_s19 }
   0x5   :  { %s109_s20 = scalar_lea.vmem %s88_s19, 64  ;;  %p114_p2 = scmp.lt.s32.totalorder %s88_s19, %s88_s19 }
   0x6   :  { %103 = vset.pattern.permute.xlu0 %v135_v3  ;;  %105 = vset.pattern.permute.xlu1 %v136_v4  ;;  %v25_v7 = vsub.s32 0, %v24_v6  ;;  %v34_v8 = vsub.s32 1, %v24_v6  ;;  %v44_v11 = vsub.s32 2, %v24_v6  ;;  %v54_v13 = vsub.s32 3, %v24_v6  ;;  %p110_p1 = scmp.ne.s32.totalorder %s88_s19, %s109_s20  ;;  %p115_p3 = scmp.lt.s32.totalorder %s109_s20, %s109_s20 }
   0x7   :  { %29 = vperm.xlu0 %103, %v15_v0   ;;  %49 = vperm.xlu1 %105, %v15_v0   ;;  %v60_v22 = vsub.s32 4, %v24_v6 }
   0x8   :  { %v26_v14 = vrot.slane %v17_v9, %v25_v7  ;;  %v35_v15 = vrot.slane %v17_v9, %v34_v8  ;;  %v45_v16 = vrot.slane %v17_v9, %v44_v11  ;;  %v55_v17 = vrot.slane %v17_v9, %v54_v13  ;;  %p116_p4 = por %p115_p3, %p114_p2 }
   0x9   :  { %v61_v27 = vrot.slane %v17_v9, %v60_v22 }
   0xa   :  { %p117_p5 = pnand %p116_p4, %p110_p1 }
   0xb   :  { %106 = vset.pattern.permute.xlu0 %v136_v4 }
  0x81   :  { %v21_v10 = vpop.permute.xlu0 %20  ;;  %v40_v12 = vpop.permute.xlu1 %39 }
  0x82   :  { %v27_v20 = vmul.f32 %v26_v14, %v21_v10  ;;  %v46_v23 = vmul.f32 %v45_v16, %v40_v12 }
  0x86   :  { %v30_v18 = vpop.permute.xlu0 %29  ;;  %v50_v19 = vpop.permute.xlu1 %49 }
  0x87   :  { %v36_v21 = vmul.f32 %v35_v15, %v30_v18  ;;  %v56_v25 = vmul.f32 %v55_v17, %v50_v19 }
  0x89   :  { %v37_v24 = vadd.f32 %v36_v21, %v27_v20 }
  0x8b   :  { %v47_v26 = vadd.f32 %v46_v23, %v37_v24 }
  0x8d   :  { %v57_v28 = vadd.f32 %v56_v25, %v47_v26 }
  0x8f   :  { %v62_v29 = vadd.f32 %v61_v27, %v57_v28 }
  0x91   :  { %v64_v30 = vsel %vm63_vm0, %v62_v29, 0.0 }
  0x92   :  { %65 = vadd.xlane.f32.xlu1 %v64_v30 }
 0x11f   :  { %v66_v31 = vpop.xlane.xlu1 %65 }
 0x120   :  { %v67_v32 = vrot.slane %v66_v31, 4 }
 0x122   :  { %v68_v33 = vadd.f32 %v67_v32, %v66_v31 }
 0x124   :  { %v69_v34 = vrot.slane %v68_v33, 2 }
 0x126   :  { %v70_v35 = vadd.f32 %v69_v34, %v68_v33 }
 0x128   :  { %v71_v36 = vrot.slane %v70_v35, 1 }
 0x12a   :  { %v72_v37 = vadd.f32 %v71_v36, %v70_v35 }
 0x12c   :  { %95 = vpush %v72_v37 }
 0x15d   :  { %s96_s2 = spop %95 }
 0x15e   :  { %p74_p0 = scmp.gt.f32.partialorder %s96_s2, 0.0 }
 0x160   :  { %s75_s15 = scalar_select %p74_p0, 1.0, -1.0 }
 0x162   :  { %v76_v39 = vstv %s75_s15 }
 0x163   :  { %v77_v40 = vmul.f32 %v76_v39, %v62_v29 }
 0x165   :  { %v78_v41 = vadd.f32 %v77_v40, %v16_v38 }
 0x167   :  { %107 = vtanh.f32 %v78_v41 }
 0x171   :  { %v108_v42 = vpop.eup %107 }
 0x172   :  { %80 = vst.msk [vmem:[#allocation2] sm:$0x7] %vm63_vm0, %v108_v42 }
 0x173   :  { %120 = shalt.err (!%p117_p5)
}
 0x174   :  { %s121_s1 = scalar_lea.hbm %s184_s3, 64 }
 0x175   :  { %p122_p6 = scmp.ne.s32.totalorder %s184_s3, %s121_s1  ;;  %p125_p7 = scmp.lt.u32.totalorder %s121_s1, %s184_s3 }
 0x177   :  { %p127_p8 = pnand %p125_p7, %p122_p6 }
 0x179   :  { %130 = shalt.err (!%p127_p8)
}
 0x17a   :  { %90 = dma.vmem_to_hbm [thread:$0]  %s88_s19, 64, %s184_s3, [#allocation3]  }
 0x17b   :  { %131 = dma.done.wait [#allocation3], 64  }
 0x17c   :  { %132 = vsyncadd [#allocation3], 4294967232 }
 0x17d   :  { %94 = vsyncpa [#allocation3], 1 }

</bundles_post_ra>
